<compile_context>
chip_gen: v7x
topology: tpu7x:2x2x1
jax: 0.10.0
libtpu: 0.0.40
codegen_flags: <defaults>
</compile_context>

<pallas_src>
import functools

import jax
import jax.numpy as jnp
from jax.experimental import pallas as pl
from jax.experimental.pallas import tpu as pltpu

# ----------------------------------------------------------------------------
# Synthetic "OrbitalMapper" bookkeeping for a 2-element, {s, p} basis.
# ----------------------------------------------------------------------------
N_TYPES = 2                       # chemical species (e.g. Si, C)
N_BOND_TYPES = N_TYPES * N_TYPES  # ordered bond types: A-A, A-B, B-A, B-B
REDUCED = 4                       # 1s-1s(1) + 1s-1p(1) + 1p-1p(2) SK integrals
N_ONSITE_ES = 2                   # onsite energies: s, p
NUM_PARAS = 2                     # powerlaw hopping: (alpha1, alpha2)
RS, W = 6.0, 0.2                  # hopping_options defaults
STD = 0.01                        # nn.init.normal_ std
SUB = 8                           # sublanes per vreg (edge-axis fold factor)

ORBPAIR_MAPS = {"1s-1s": slice(0, 1), "1s-1p": slice(1, 2), "1p-1p": slice(2, 4)}
# bond type i-j reversed -> j-i  ([A-A, A-B, B-A, B-B] -> [A-A, B-A, A-B, B-B])
REFLECTIVE_BONDS = jnp.array([0, 2, 1, 3], dtype=jnp.int32)
ANGSTROM_TO_BOHR = 1.8897259886


def symmetrize_hopping(params: jnp.ndarray) -> jnp.ndarray:
    """Mirror of the in-place symmetrization in NNSK.forward (equal orbital pairs)."""
    reflect = params[REFLECTIVE_BONDS]
    out = params
    for k, sl in ORBPAIR_MAPS.items():
        iorb, jorb = k.split("-")
        if iorb == jorb:
            out = out.at[:, sl, :].set(0.5 * (params[:, sl, :] + reflect[:, sl, :]))
    return out


# ----------------------------------------------------------------------------
# Pallas kernel: HoppingFormula.powerlaw (get_skhij), 8-sublane x lane-dense.
# ----------------------------------------------------------------------------
def hopping_powerlaw_kernel(tbl_ref, etype_ref, rij_ref, out_ref, *,
                            rs, inv_w, n_bond_types, reduced, sub):
    """h[r, e] = a1 * (r0/rij)^(1+|a2|) / (1 + exp((rij - rs)/w)).

    tbl_ref:   [2R, n_bt] f32 SMEM.  rows 0..R-1  : c = a1 * (r0/bohr)^(1+|a2|)
                                     rows R..2R-1 : p = 1 + |a2|
    etype_ref: [8, TL] int32 VMEM    (edge e lives at (e // n_lanes, e % n_lanes))
    rij_ref:   [8, TL] f32  VMEM
    out_ref:   [R*8, TL] f32 VMEM    row r*8+s, col l  ==  feature r of edge (s, l)
    """
    etype = etype_ref[...]                         # [8, TL]
    rij = rij_ref[...]                             # [8, TL]

    # Shared per-edge factors: ONE log, ONE exp and ONE exact divide per edge
    # (instead of per (edge, reduced-element)); applied below as multiplies.
    neg_log_rij = -jnp.log(rij)                    # [8, TL]
    inv_fc = 1.0 / (1.0 + jnp.exp((rij - rs) * inv_w))   # [8, TL] exact (rtol budget)

    for r in range(reduced):
        # Gather the per-bond-type scalars with an unrolled n_bt-way select
        # (pure VPU work on full 8x128 vregs; scalars come from SMEM).
        c = jnp.zeros_like(rij)
        p = jnp.zeros_like(rij)
        for b in range(n_bond_types):
            m = etype == b                         # [8, TL]
            c = jnp.where(m, tbl_ref[r, b], c)
            p = jnp.where(m, tbl_ref[reduced + r, b], p)
        # a1 * (r0/rij)^p / (1+exp((rij-rs)/w))  ==  c * exp(-p*log(rij)) * inv_fc
        out_ref[r * sub:(r + 1) * sub, :] = c * jnp.exp(p * neg_log_rij) * inv_fc


# ----------------------------------------------------------------------------
# Wrapper
# ----------------------------------------------------------------------------
def nnsk_edge_features(hopping_param, edge_type, rij, r0_bond_type,
                       *, rs, w, tile_edges=65536):
    """Edge SK hoppings (EDGE_FEATURES_KEY), lane-dense layout.

    hopping_param: [n_bond_types, R, 2]   (already symmetrized)
    edge_type:     [E] int32
    rij:           [E] f32  (angstrom)
    r0_bond_type:  [n_bond_types] f32 (angstrom) — r0 depends only on bond type
    returns:       [R, E_pad] f32 — feature-major, lane-dense.  Only columns
                   [:E] are valid (the padded tail holds finite garbage and is
                   never indexed by the consumer); feature r of edge e is
                   out[r, e].  This avoids the extra HBM round-trip of a
                   post-kernel transpose/slice of the hot output.
    """
    n_bt, R, _ = hopping_param.shape
    E = int(rij.shape[0])
    assert tile_edges % (SUB * 128) == 0

    # Tiny per-bond-type tables (16 floats each), precombined host-side:
    #   c[bt, r] = a1 * (r0/bohr)^(1+|a2|),   p[bt, r] = 1 + |a2|
    a1 = hopping_param[:, :, 0].astype(jnp.float32)                      # [n_bt, R]
    p = (1.0 + jnp.abs(hopping_param[:, :, 1])).astype(jnp.float32)      # [n_bt, R]
    r0_bohr = (r0_bond_type.astype(jnp.float32) / ANGSTROM_TO_BOHR)[:, None]
    c = a1 * r0_bohr ** p                                                # [n_bt, R]
    tbl = jnp.concatenate([c.T, p.T], axis=0)                            # [2R, n_bt]

    # Pad the edge axis to a multiple of 8*128 (jnp.pad, no scatter copies) and
    # fold 8 edges into the sublane axis: edge e -> (e // n_lanes, e % n_lanes).
    e_pad = pl.cdiv(E, SUB * 128) * (SUB * 128)
    n_lanes = e_pad // SUB
    etype_p = jnp.pad(edge_type.astype(jnp.int32), (0, e_pad - E)
                      ).reshape(SUB, n_lanes)
    rij_p = jnp.pad(rij.astype(jnp.float32), (0, e_pad - E),
                    constant_values=1.0).reshape(SUB, n_lanes)   # pad keeps log finite

    # Lane-tile selection: as big as the problem allows (the kernel is
    # per-step-overhead bound, not VMEM bound), but keep >= 2 grid steps when
    # possible so v7x's two TensorCores both get work via "parallel" semantics.
    tile_lanes = min(tile_edges // SUB, n_lanes)                 # multiple of 128
    if n_lanes >= 2 * 128 and pl.cdiv(n_lanes, tile_lanes) < 2:
        tile_lanes = pl.cdiv(pl.cdiv(n_lanes, 2), 128) * 128
    grid = (pl.cdiv(n_lanes, tile_lanes),)

    kern = functools.partial(
        hopping_powerlaw_kernel,
        rs=float(rs), inv_w=float(1.0 / w),
        n_bond_types=n_bt, reduced=R, sub=SUB)

    out = pl.pallas_call(
        kern,
        out_shape=jax.ShapeDtypeStruct((R * SUB, n_lanes), jnp.float32),
        grid=grid,
        in_specs=[
            pl.BlockSpec(memory_space=pltpu.MemorySpace.SMEM),     # tiny [2R,n_bt] table
            pl.BlockSpec((SUB, tile_lanes), lambda i: (0, i)),     # edge_type
            pl.BlockSpec((SUB, tile_lanes), lambda i: (0, i)),     # rij
        ],
        out_specs=pl.BlockSpec((R * SUB, tile_lanes), lambda i: (0, i)),
        compiler_params=pltpu.CompilerParams(dimension_semantics=("parallel",)),
    )(tbl, etype_p, rij_p)

    # Contiguous (free) reshape: [R*8, n_lanes] -> [R, e_pad]; no transpose,
    # no slice of the hot output.
    return out.reshape(R, e_pad)


def nnsk_node_features(e_base_table, onsite_param, atom_type):
    """Onsite 'uniform' node features: E_base[type] + learned shift.

    Plain JAX per the perf review — a pallas_call launch costs far more than
    these ~N_ATOMS*N_ONSITE_ES adds, and XLA fuses this trivially.
    """
    return e_base_table[atom_type] + onsite_param[atom_type, :, 0]


# ----------------------------------------------------------------------------
# Driver
# ----------------------------------------------------------------------------
if __name__ == "__main__":
    key = jax.random.PRNGKey(0)
    kh, kon, ket, kat, kr = jax.random.split(key, 5)

    E = 300        # edges (deliberately not a multiple of 1024: exercises padding)
    N_ATOMS = 16   # atoms

    # Deterministic parameter init (nn.init.normal_(mean=0, std=STD)).
    hopping_param = STD * jax.random.normal(
        kh, (N_BOND_TYPES, REDUCED, NUM_PARAS), dtype=jnp.float32)
    onsite_param = STD * jax.random.normal(
        kon, (N_TYPES, N_ONSITE_ES, 1), dtype=jnp.float32)

    # Synthetic AtomicDataDict fields.
    atomic_numbers_per_type = jnp.array([14, 6], dtype=jnp.int32)   # Si, C
    atom_type = jax.random.randint(kat, (N_ATOMS,), 0, N_TYPES)
    edge_type = jax.random.randint(ket, (E,), 0, N_BOND_TYPES)
    rij = jax.random.uniform(kr, (E,), minval=1.5, maxval=5.0, dtype=jnp.float32)

    # Synthetic bond_length_list for the first 83 elements (deterministic).
    bond_length_list = jnp.linspace(1.0, 3.0, 83, dtype=jnp.float32)

    # untransform_bond: bond type -> (z_i, z_j).  r0 depends only on the bond
    # type, so precompute the 4-entry per-bond-type table.
    bt = jnp.arange(N_BOND_TYPES, dtype=jnp.int32)
    bt_iz = atomic_numbers_per_type[bt // N_TYPES]
    bt_jz = atomic_numbers_per_type[bt % N_TYPES]
    r0_bond_type = 0.5 * (bond_length_list[bt_iz - 1] + bond_length_list[bt_jz - 1])

    # Parameter symmetrization for equal orbital pairs (as in forward()).
    hopping_param = symmetrize_hopping(hopping_param)

    # ---- EDGE_FEATURES_KEY : powerlaw SK hoppings (Pallas hot path) ----
    edge_features = nnsk_edge_features(
        hopping_param, edge_type, rij, r0_bond_type, rs=RS, w=W)

    # ---- NODE_FEATURES_KEY : onsite 'uniform' energies (plain JAX glue) ----
    e_base_table = jnp.array([[-13.6, -5.0], [-19.4, -10.7]], dtype=jnp.float32)
    node_features = nnsk_node_features(e_base_table, onsite_param, atom_type)

    edge_features, node_features = jax.block_until_ready(
        (edge_features, node_features))

    # ---- reference check (plain JAX, mirrors HoppingFormula.powerlaw) ----
    params_e = hopping_param[edge_type]
    a1_e = params_e[..., 0]
    a2_e = jnp.abs(params_e[..., 1])
    r0_e = r0_bond_type[edge_type]
    ratio = ((r0_e / ANGSTROM_TO_BOHR) / rij)[:, None]
    ref_edge = a1_e * ratio ** (1.0 + a2_e) / (1.0 + jnp.exp((rij[:, None] - RS) / W))
    ref_node = e_base_table[atom_type] + onsite_param[atom_type, :, 0]

    assert edge_features.shape[0] == REDUCED and edge_features.shape[1] >= E
    got_edge = edge_features[:, :E]        # strip padding for the test only
    assert jnp.allclose(got_edge, ref_edge.T, rtol=1e-4, atol=1e-6), "edge mismatch"
    assert jnp.allclose(node_features, ref_node, rtol=1e-4, atol=1e-6), "node mismatch"

    print("KERNEL_OK")
</pallas_src>

<mosaic_0001>
module attributes {stable_mosaic.version = 11 : i64} {
  func.func @hopping_powerlaw_kernel(%arg0: i32, %arg1: memref<8x4xf32, #tpu.memory_space<smem>>, %arg2: memref<8x128xi32, #tpu.memory_space<vmem>>, %arg3: memref<8x128xf32, #tpu.memory_space<vmem>>, %arg4: memref<32x128xf32, #tpu.memory_space<vmem>>) attributes {dimension_semantics = [#tpu.dimension_semantics<parallel>], iteration_bounds = array<i64: 1>, scalar_prefetch = 0 : i64, scratch_operands = 0 : i64, tpu.core_type = #tpu.core_type<tc>, window_params = [{transform_indices = @transform_0, window_bounds = array<i64: 8, 4>}, {transform_indices = @transform_1, window_bounds = array<i64: 8, 128>}, {transform_indices = @transform_2, window_bounds = array<i64: 8, 128>}, {transform_indices = @transform_3, window_bounds = array<i64: 32, 128>}]} {
    %c0 = arith.constant 0 : index
    %c0_0 = arith.constant 0 : index
    %0 = vector.load %arg2[%c0, %c0_0] : memref<8x128xi32, #tpu.memory_space<vmem>>, vector<8x128xi32>
    %c0_1 = arith.constant 0 : index
    %c0_2 = arith.constant 0 : index
    %1 = vector.load %arg3[%c0_1, %c0_2] : memref<8x128xf32, #tpu.memory_space<vmem>>, vector<8x128xf32>
    %2 = math.log %1 : vector<8x128xf32>
    %cst = arith.constant 0.000000e+00 : f32
    %3 = vector.broadcast %cst : f32 to vector<8x128xf32>
    %4 = arith.subf %3, %2 : vector<8x128xf32>
    %cst_3 = arith.constant 6.000000e+00 : f32
    %5 = vector.broadcast %cst_3 : f32 to vector<8x128xf32>
    %6 = arith.subf %1, %5 : vector<8x128xf32>
    %cst_4 = arith.constant 5.000000e+00 : f32
    %7 = vector.broadcast %cst_4 : f32 to vector<8x128xf32>
    %8 = arith.mulf %6, %7 : vector<8x128xf32>
    %9 = math.exp %8 : vector<8x128xf32>
    %cst_5 = arith.constant 1.000000e+00 : f32
    %10 = vector.broadcast %cst_5 : f32 to vector<8x128xf32>
    %11 = arith.addf %10, %9 : vector<8x128xf32>
    %cst_6 = arith.constant 1.000000e+00 : f32
    %12 = vector.broadcast %cst_6 : f32 to vector<8x128xf32>
    %13 = arith.divf %12, %11 : vector<8x128xf32>
    %cst_7 = arith.constant 0.000000e+00 : f32
    %14 = vector.broadcast %cst_7 : f32 to vector<8x128xf32>
    %cst_8 = arith.constant 0.000000e+00 : f32
    %15 = vector.broadcast %cst_8 : f32 to vector<8x128xf32>
    %c0_i32 = arith.constant 0 : i32
    %16 = vector.broadcast %c0_i32 : i32 to vector<8x128xi32>
    %17 = arith.cmpi eq, %0, %16 : vector<8x128xi32>
    %c0_9 = arith.constant 0 : index
    %c0_10 = arith.constant 0 : index
    %18 = memref.load %arg1[%c0_9, %c0_10] : memref<8x4xf32, #tpu.memory_space<smem>>
    %19 = vector.broadcast %18 : f32 to vector<8x128xf32>
    %20 = arith.select %17, %19, %14 : vector<8x128xi1>, vector<8x128xf32>
    %c4 = arith.constant 4 : index
    %c0_11 = arith.constant 0 : index
    %21 = memref.load %arg1[%c4, %c0_11] : memref<8x4xf32, #tpu.memory_space<smem>>
    %22 = vector.broadcast %21 : f32 to vector<8x128xf32>
    %23 = arith.select %17, %22, %15 : vector<8x128xi1>, vector<8x128xf32>
    %c1_i32 = arith.constant 1 : i32
    %24 = vector.broadcast %c1_i32 : i32 to vector<8x128xi32>
    %25 = arith.cmpi eq, %0, %24 : vector<8x128xi32>
    %c0_12 = arith.constant 0 : index
    %c1 = arith.constant 1 : index
    %26 = memref.load %arg1[%c0_12, %c1] : memref<8x4xf32, #tpu.memory_space<smem>>
    %27 = vector.broadcast %26 : f32 to vector<8x128xf32>
    %28 = arith.select %25, %27, %20 : vector<8x128xi1>, vector<8x128xf32>
    %c4_13 = arith.constant 4 : index
    %c1_14 = arith.constant 1 : index
    %29 = memref.load %arg1[%c4_13, %c1_14] : memref<8x4xf32, #tpu.memory_space<smem>>
    %30 = vector.broadcast %29 : f32 to vector<8x128xf32>
    %31 = arith.select %25, %30, %23 : vector<8x128xi1>, vector<8x128xf32>
    %c2_i32 = arith.constant 2 : i32
    %32 = vector.broadcast %c2_i32 : i32 to vector<8x128xi32>
    %33 = arith.cmpi eq, %0, %32 : vector<8x128xi32>
    %c0_15 = arith.constant 0 : index
    %c2 = arith.constant 2 : index
    %34 = memref.load %arg1[%c0_15, %c2] : memref<8x4xf32, #tpu.memory_space<smem>>
    %35 = vector.broadcast %34 : f32 to vector<8x128xf32>
    %36 = arith.select %33, %35, %28 : vector<8x128xi1>, vector<8x128xf32>
    %c4_16 = arith.constant 4 : index
    %c2_17 = arith.constant 2 : index
    %37 = memref.load %arg1[%c4_16, %c2_17] : memref<8x4xf32, #tpu.memory_space<smem>>
    %38 = vector.broadcast %37 : f32 to vector<8x128xf32>
    %39 = arith.select %33, %38, %31 : vector<8x128xi1>, vector<8x128xf32>
    %c3_i32 = arith.constant 3 : i32
    %40 = vector.broadcast %c3_i32 : i32 to vector<8x128xi32>
    %41 = arith.cmpi eq, %0, %40 : vector<8x128xi32>
    %c0_18 = arith.constant 0 : index
    %c3 = arith.constant 3 : index
    %42 = memref.load %arg1[%c0_18, %c3] : memref<8x4xf32, #tpu.memory_space<smem>>
    %43 = vector.broadcast %42 : f32 to vector<8x128xf32>
    %44 = arith.select %41, %43, %36 : vector<8x128xi1>, vector<8x128xf32>
    %c4_19 = arith.constant 4 : index
    %c3_20 = arith.constant 3 : index
    %45 = memref.load %arg1[%c4_19, %c3_20] : memref<8x4xf32, #tpu.memory_space<smem>>
    %46 = vector.broadcast %45 : f32 to vector<8x128xf32>
    %47 = arith.select %41, %46, %39 : vector<8x128xi1>, vector<8x128xf32>
    %48 = arith.mulf %47, %4 : vector<8x128xf32>
    %49 = math.exp %48 : vector<8x128xf32>
    %50 = arith.mulf %44, %49 : vector<8x128xf32>
    %51 = arith.mulf %50, %13 : vector<8x128xf32>
    %c0_21 = arith.constant 0 : index
    %c0_22 = arith.constant 0 : index
    %52 = vector.load %arg4[%c0_21, %c0_22] : memref<32x128xf32, #tpu.memory_space<vmem>>, vector<8x128xf32>
    tpu.vector_store %arg4[%c0_21, %c0_22], %51 {strides = array<i32>} : memref<32x128xf32, #tpu.memory_space<vmem>>, vector<8x128xf32>,
    %cst_23 = arith.constant 0.000000e+00 : f32
    %53 = vector.broadcast %cst_23 : f32 to vector<8x128xf32>
    %cst_24 = arith.constant 0.000000e+00 : f32
    %54 = vector.broadcast %cst_24 : f32 to vector<8x128xf32>
    %c0_i32_25 = arith.constant 0 : i32
    %55 = vector.broadcast %c0_i32_25 : i32 to vector<8x128xi32>
    %56 = arith.cmpi eq, %0, %55 : vector<8x128xi32>
    %c1_26 = arith.constant 1 : index
    %c0_27 = arith.constant 0 : index
    %57 = memref.load %arg1[%c1_26, %c0_27] : memref<8x4xf32, #tpu.memory_space<smem>>
    %58 = vector.broadcast %57 : f32 to vector<8x128xf32>
    %59 = arith.select %56, %58, %53 : vector<8x128xi1>, vector<8x128xf32>
    %c5 = arith.constant 5 : index
    %c0_28 = arith.constant 0 : index
    %60 = memref.load %arg1[%c5, %c0_28] : memref<8x4xf32, #tpu.memory_space<smem>>
    %61 = vector.broadcast %60 : f32 to vector<8x128xf32>
    %62 = arith.select %56, %61, %54 : vector<8x128xi1>, vector<8x128xf32>
    %c1_i32_29 = arith.constant 1 : i32
    %63 = vector.broadcast %c1_i32_29 : i32 to vector<8x128xi32>
    %64 = arith.cmpi eq, %0, %63 : vector<8x128xi32>
    %c1_30 = arith.constant 1 : index
    %c1_31 = arith.constant 1 : index
    %65 = memref.load %arg1[%c1_30, %c1_31] : memref<8x4xf32, #tpu.memory_space<smem>>
    %66 = vector.broadcast %65 : f32 to vector<8x128xf32>
    %67 = arith.select %64, %66, %59 : vector<8x128xi1>, vector<8x128xf32>
    %c5_32 = arith.constant 5 : index
    %c1_33 = arith.constant 1 : index
    %68 = memref.load %arg1[%c5_32, %c1_33] : memref<8x4xf32, #tpu.memory_space<smem>>
    %69 = vector.broadcast %68 : f32 to vector<8x128xf32>
    %70 = arith.select %64, %69, %62 : vector<8x128xi1>, vector<8x128xf32>
    %c2_i32_34 = arith.constant 2 : i32
    %71 = vector.broadcast %c2_i32_34 : i32 to vector<8x128xi32>
    %72 = arith.cmpi eq, %0, %71 : vector<8x128xi32>
    %c1_35 = arith.constant 1 : index
    %c2_36 = arith.constant 2 : index
    %73 = memref.load %arg1[%c1_35, %c2_36] : memref<8x4xf32, #tpu.memory_space<smem>>
    %74 = vector.broadcast %73 : f32 to vector<8x128xf32>
    %75 = arith.select %72, %74, %67 : vector<8x128xi1>, vector<8x128xf32>
    %c5_37 = arith.constant 5 : index
    %c2_38 = arith.constant 2 : index
    %76 = memref.load %arg1[%c5_37, %c2_38] : memref<8x4xf32, #tpu.memory_space<smem>>
    %77 = vector.broadcast %76 : f32 to vector<8x128xf32>
    %78 = arith.select %72, %77, %70 : vector<8x128xi1>, vector<8x128xf32>
    %c3_i32_39 = arith.constant 3 : i32
    %79 = vector.broadcast %c3_i32_39 : i32 to vector<8x128xi32>
    %80 = arith.cmpi eq, %0, %79 : vector<8x128xi32>
    %c1_40 = arith.constant 1 : index
    %c3_41 = arith.constant 3 : index
    %81 = memref.load %arg1[%c1_40, %c3_41] : memref<8x4xf32, #tpu.memory_space<smem>>
    %82 = vector.broadcast %81 : f32 to vector<8x128xf32>
    %83 = arith.select %80, %82, %75 : vector<8x128xi1>, vector<8x128xf32>
    %c5_42 = arith.constant 5 : index
    %c3_43 = arith.constant 3 : index
    %84 = memref.load %arg1[%c5_42, %c3_43] : memref<8x4xf32, #tpu.memory_space<smem>>
    %85 = vector.broadcast %84 : f32 to vector<8x128xf32>
    %86 = arith.select %80, %85, %78 : vector<8x128xi1>, vector<8x128xf32>
    %87 = arith.mulf %86, %4 : vector<8x128xf32>
    %88 = math.exp %87 : vector<8x128xf32>
    %89 = arith.mulf %83, %88 : vector<8x128xf32>
    %90 = arith.mulf %89, %13 : vector<8x128xf32>
    %c8 = arith.constant 8 : index
    %c0_44 = arith.constant 0 : index
    %91 = vector.load %arg4[%c8, %c0_44] : memref<32x128xf32, #tpu.memory_space<vmem>>, vector<8x128xf32>
    tpu.vector_store %arg4[%c8, %c0_44], %90 {strides = array<i32>} : memref<32x128xf32, #tpu.memory_space<vmem>>, vector<8x128xf32>,
    %cst_45 = arith.constant 0.000000e+00 : f32
    %92 = vector.broadcast %cst_45 : f32 to vector<8x128xf32>
    %cst_46 = arith.constant 0.000000e+00 : f32
    %93 = vector.broadcast %cst_46 : f32 to vector<8x128xf32>
    %c0_i32_47 = arith.constant 0 : i32
    %94 = vector.broadcast %c0_i32_47 : i32 to vector<8x128xi32>
    %95 = arith.cmpi eq, %0, %94 : vector<8x128xi32>
    %c2_48 = arith.constant 2 : index
    %c0_49 = arith.constant 0 : index
    %96 = memref.load %arg1[%c2_48, %c0_49] : memref<8x4xf32, #tpu.memory_space<smem>>
    %97 = vector.broadcast %96 : f32 to vector<8x128xf32>
    %98 = arith.select %95, %97, %92 : vector<8x128xi1>, vector<8x128xf32>
    %c6 = arith.constant 6 : index
    %c0_50 = arith.constant 0 : index
    %99 = memref.load %arg1[%c6, %c0_50] : memref<8x4xf32, #tpu.memory_space<smem>>
    %100 = vector.broadcast %99 : f32 to vector<8x128xf32>
    %101 = arith.select %95, %100, %93 : vector<8x128xi1>, vector<8x128xf32>
    %c1_i32_51 = arith.constant 1 : i32
    %102 = vector.broadcast %c1_i32_51 : i32 to vector<8x128xi32>
    %103 = arith.cmpi eq, %0, %102 : vector<8x128xi32>
    %c2_52 = arith.constant 2 : index
    %c1_53 = arith.constant 1 : index
    %104 = memref.load %arg1[%c2_52, %c1_53] : memref<8x4xf32, #tpu.memory_space<smem>>
    %105 = vector.broadcast %104 : f32 to vector<8x128xf32>
    %106 = arith.select %103, %105, %98 : vector<8x128xi1>, vector<8x128xf32>
    %c6_54 = arith.constant 6 : index
    %c1_55 = arith.constant 1 : index
    %107 = memref.load %arg1[%c6_54, %c1_55] : memref<8x4xf32, #tpu.memory_space<smem>>
    %108 = vector.broadcast %107 : f32 to vector<8x128xf32>
    %109 = arith.select %103, %108, %101 : vector<8x128xi1>, vector<8x128xf32>
    %c2_i32_56 = arith.constant 2 : i32
    %110 = vector.broadcast %c2_i32_56 : i32 to vector<8x128xi32>
    %111 = arith.cmpi eq, %0, %110 : vector<8x128xi32>
    %c2_57 = arith.constant 2 : index
    %c2_58 = arith.constant 2 : index
    %112 = memref.load %arg1[%c2_57, %c2_58] : memref<8x4xf32, #tpu.memory_space<smem>>
    %113 = vector.broadcast %112 : f32 to vector<8x128xf32>
    %114 = arith.select %111, %113, %106 : vector<8x128xi1>, vector<8x128xf32>
    %c6_59 = arith.constant 6 : index
    %c2_60 = arith.constant 2 : index
    %115 = memref.load %arg1[%c6_59, %c2_60] : memref<8x4xf32, #tpu.memory_space<smem>>
    %116 = vector.broadcast %115 : f32 to vector<8x128xf32>
    %117 = arith.select %111, %116, %109 : vector<8x128xi1>, vector<8x128xf32>
    %c3_i32_61 = arith.constant 3 : i32
    %118 = vector.broadcast %c3_i32_61 : i32 to vector<8x128xi32>
    %119 = arith.cmpi eq, %0, %118 : vector<8x128xi32>
    %c2_62 = arith.constant 2 : index
    %c3_63 = arith.constant 3 : index
    %120 = memref.load %arg1[%c2_62, %c3_63] : memref<8x4xf32, #tpu.memory_space<smem>>
    %121 = vector.broadcast %120 : f32 to vector<8x128xf32>
    %122 = arith.select %119, %121, %114 : vector<8x128xi1>, vector<8x128xf32>
    %c6_64 = arith.constant 6 : index
    %c3_65 = arith.constant 3 : index
    %123 = memref.load %arg1[%c6_64, %c3_65] : memref<8x4xf32, #tpu.memory_space<smem>>
    %124 = vector.broadcast %123 : f32 to vector<8x128xf32>
    %125 = arith.select %119, %124, %117 : vector<8x128xi1>, vector<8x128xf32>
    %126 = arith.mulf %125, %4 : vector<8x128xf32>
    %127 = math.exp %126 : vector<8x128xf32>
    %128 = arith.mulf %122, %127 : vector<8x128xf32>
    %129 = arith.mulf %128, %13 : vector<8x128xf32>
    %c16 = arith.constant 16 : index
    %c0_66 = arith.constant 0 : index
    %130 = vector.load %arg4[%c16, %c0_66] : memref<32x128xf32, #tpu.memory_space<vmem>>, vector<8x128xf32>
    tpu.vector_store %arg4[%c16, %c0_66], %129 {strides = array<i32>} : memref<32x128xf32, #tpu.memory_space<vmem>>, vector<8x128xf32>,
    %cst_67 = arith.constant 0.000000e+00 : f32
    %131 = vector.broadcast %cst_67 : f32 to vector<8x128xf32>
    %cst_68 = arith.constant 0.000000e+00 : f32
    %132 = vector.broadcast %cst_68 : f32 to vector<8x128xf32>
    %c0_i32_69 = arith.constant 0 : i32
    %133 = vector.broadcast %c0_i32_69 : i32 to vector<8x128xi32>
    %134 = arith.cmpi eq, %0, %133 : vector<8x128xi32>
    %c3_70 = arith.constant 3 : index
    %c0_71 = arith.constant 0 : index
    %135 = memref.load %arg1[%c3_70, %c0_71] : memref<8x4xf32, #tpu.memory_space<smem>>
    %136 = vector.broadcast %135 : f32 to vector<8x128xf32>
    %137 = arith.select %134, %136, %131 : vector<8x128xi1>, vector<8x128xf32>
    %c7 = arith.constant 7 : index
    %c0_72 = arith.constant 0 : index
    %138 = memref.load %arg1[%c7, %c0_72] : memref<8x4xf32, #tpu.memory_space<smem>>
    %139 = vector.broadcast %138 : f32 to vector<8x128xf32>
    %140 = arith.select %134, %139, %132 : vector<8x128xi1>, vector<8x128xf32>
    %c1_i32_73 = arith.constant 1 : i32
    %141 = vector.broadcast %c1_i32_73 : i32 to vector<8x128xi32>
    %142 = arith.cmpi eq, %0, %141 : vector<8x128xi32>
    %c3_74 = arith.constant 3 : index
    %c1_75 = arith.constant 1 : index
    %143 = memref.load %arg1[%c3_74, %c1_75] : memref<8x4xf32, #tpu.memory_space<smem>>
    %144 = vector.broadcast %143 : f32 to vector<8x128xf32>
    %145 = arith.select %142, %144, %137 : vector<8x128xi1>, vector<8x128xf32>
    %c7_76 = arith.constant 7 : index
    %c1_77 = arith.constant 1 : index
    %146 = memref.load %arg1[%c7_76, %c1_77] : memref<8x4xf32, #tpu.memory_space<smem>>
    %147 = vector.broadcast %146 : f32 to vector<8x128xf32>
    %148 = arith.select %142, %147, %140 : vector<8x128xi1>, vector<8x128xf32>
    %c2_i32_78 = arith.constant 2 : i32
    %149 = vector.broadcast %c2_i32_78 : i32 to vector<8x128xi32>
    %150 = arith.cmpi eq, %0, %149 : vector<8x128xi32>
    %c3_79 = arith.constant 3 : index
    %c2_80 = arith.constant 2 : index
    %151 = memref.load %arg1[%c3_79, %c2_80] : memref<8x4xf32, #tpu.memory_space<smem>>
    %152 = vector.broadcast %151 : f32 to vector<8x128xf32>
    %153 = arith.select %150, %152, %145 : vector<8x128xi1>, vector<8x128xf32>
    %c7_81 = arith.constant 7 : index
    %c2_82 = arith.constant 2 : index
    %154 = memref.load %arg1[%c7_81, %c2_82] : memref<8x4xf32, #tpu.memory_space<smem>>
    %155 = vector.broadcast %154 : f32 to vector<8x128xf32>
    %156 = arith.select %150, %155, %148 : vector<8x128xi1>, vector<8x128xf32>
    %c3_i32_83 = arith.constant 3 : i32
    %157 = vector.broadcast %c3_i32_83 : i32 to vector<8x128xi32>
    %158 = arith.cmpi eq, %0, %157 : vector<8x128xi32>
    %c3_84 = arith.constant 3 : index
    %c3_85 = arith.constant 3 : index
    %159 = memref.load %arg1[%c3_84, %c3_85] : memref<8x4xf32, #tpu.memory_space<smem>>
    %160 = vector.broadcast %159 : f32 to vector<8x128xf32>
    %161 = arith.select %158, %160, %153 : vector<8x128xi1>, vector<8x128xf32>
    %c7_86 = arith.constant 7 : index
    %c3_87 = arith.constant 3 : index
    %162 = memref.load %arg1[%c7_86, %c3_87] : memref<8x4xf32, #tpu.memory_space<smem>>
    %163 = vector.broadcast %162 : f32 to vector<8x128xf32>
    %164 = arith.select %158, %163, %156 : vector<8x128xi1>, vector<8x128xf32>
    %165 = arith.mulf %164, %4 : vector<8x128xf32>
    %166 = math.exp %165 : vector<8x128xf32>
    %167 = arith.mulf %161, %166 : vector<8x128xf32>
    %168 = arith.mulf %167, %13 : vector<8x128xf32>
    %c24 = arith.constant 24 : index
    %c0_88 = arith.constant 0 : index
    %169 = vector.load %arg4[%c24, %c0_88] : memref<32x128xf32, #tpu.memory_space<vmem>>, vector<8x128xf32>
    tpu.vector_store %arg4[%c24, %c0_88], %168 {strides = array<i32>} : memref<32x128xf32, #tpu.memory_space<vmem>>, vector<8x128xf32>,
    return
  }
  func.func @transform_0(%arg0: i32) -> (i32, i32) {
    %c0_i32 = arith.constant 0 : i32
    %c0_i32_0 = arith.constant 0 : i32
    %c0_i32_1 = arith.constant 0 : i32
    return %c0_i32, %c0_i32_0 : i32, i32
  }
  func.func @transform_1(%arg0: i32) -> (i32, i32) {
    %c0_i32 = arith.constant 0 : i32
    %c0_i32_0 = arith.constant 0 : i32
    return %c0_i32, %arg0 : i32, i32
  }
  func.func @transform_2(%arg0: i32) -> (i32, i32) {
    %c0_i32 = arith.constant 0 : i32
    %c0_i32_0 = arith.constant 0 : i32
    return %c0_i32, %arg0 : i32, i32
  }
  func.func @transform_3(%arg0: i32) -> (i32, i32) {
    %c0_i32 = arith.constant 0 : i32
    %c0_i32_0 = arith.constant 0 : i32
    return %c0_i32, %arg0 : i32, i32
  }
}

</mosaic_0001>

<bundles_post_ra>
// kernel: tpu_custom_call.1
= control target key start
LH: loop header
LB: loop body
LE: loop exit
PB: predicated region body
PF: predicated region fallthrough
CT: control target
= control target key end

     0   :  { %8 = vsyncpa [#allocation4], 0  ;;  %s459_s0 = inlined_call_operand.vmem [shape: f32[8,4], index: 0, kind: input, shape index: {}]   ;;  %s460_s1 = inlined_call_operand.vmem [shape: s32[8,128], index: 1, kind: input, shape index: {}]   ;;  %s461_s2 = inlined_call_operand.vmem [shape: f32[8,128], index: 2, kind: input, shape index: {}]   ;;  %s462_s3 = inlined_call_operand.hbm [shape: f32[32,128], index: 3, kind: output, shape index: {}]  }
   0x1   :  { %9 = vsyncpa [#allocation3], 0  ;;  %s16_s14 = sshll.u32 %s459_s0, 4  ;;  %s17_s14 = int_to_ptr.vmem [resolvable:$true] %s16_s14 }
   0x2   :  { %s231_s15 = scalar_lea.vmem %s17_s14, 128  ;;  %p236_p1 = scmp.lt.s32.totalorder %s17_s14, %s17_s14 }
   0x3   :  { %p232_p0 = scmp.ne.s32.totalorder %s17_s14, %s231_s15  ;;  %p237_p2 = scmp.lt.s32.totalorder %s231_s15, %s231_s15 }
   0x5   :  { %p238_p3 = por %p237_p2, %p236_p1 }
   0x7   :  { %p239_p4 = pnand %p238_p3, %p232_p0 }
   0x9   :  { %242 = shalt.err (!%p239_p4)
}
   0xa   :  { %s269_s16 = smov [#allocation2]  }
   0xb   :  { %19 = dma.vmem_to_smem %s17_s14, 128, %s269_s16, [#allocation4]  }
   0xc   :  { %265 = dma.done.wait [#allocation4], 128  }
   0xd   :  { %266 = vsyncadd [#allocation4], 4294967168 }
   0xe   :  { %27 = sfence }
   0xf   :  { %v29_v0 = vld [vmem:[%s461_s2] sm:$0xff]  ;;  %s182_s19 = sld [smem:[#allocation2 + $0x200]]  ;;  %s184_s21 = sld [smem:[#allocation2 + $0x201]] }
  0x10   :  { %v302_v1 = vld [vmem:[%s460_s1] sm:$0xff]  ;;  %217 = vlog2.f32 %v29_v0  ;;  %v181_v2 = vadd.f32 -6.0, %v29_v0  ;;  %s186_s22 = sld [smem:[#allocation2 + $0x202]]  ;;  %s188_s23 = sld [smem:[#allocation2 + $0x203]] }
  0x11   :  { %vm40_vm0 = vcmp.eq.s32.totalorder %v302_v1, 0  ;;  %s190_s24 = sld [smem:[#allocation2 + $0x280]]  ;;  %vm47_vm1 = vcmp.eq.s32.totalorder %v302_v1, 1  ;;  %s192_s2 = sld [smem:[#allocation2 + $0x281]]  ;;  %vm54_vm2 = vcmp.eq.s32.totalorder %v302_v1, 2  ;;  %vm61_vm3 = vcmp.eq.s32.totalorder %v302_v1, 3 }
  0x12   :  { %v34_v3 = vmul.f32 5.0, %v181_v2  ;;  %s194_s1 = sld [smem:[#allocation2 + $0x282]]  ;;  %s309_s25 = sld [smem:[#allocation2]] }
  0x13   :  { %s196_s26 = sld [smem:[#allocation2 + $0x283]]  ;;  %s313_s27 = sld [smem:[#allocation2 + $0x80]] }
  0x14   :  { %v35_v4 = vmul.f32 1.442695, %v34_v3  ;;  %s315_s28 = sld [smem:[#allocation2 + $0x300]]  ;;  %s320_s29 = sld [smem:[#allocation2 + $0x301]] }
  0x15   :  { %v45_v5 = vstv %s182_s19  ;;  %v52_v7 = vstv %s184_s21  ;;  %s322_s30 = sld [smem:[#allocation2 + $0x1]]  ;;  %s324_s4 = sld [smem:[#allocation2 + $0x302]] }
  0x16   :  { %219 = vpow2.f32 %v35_v4  ;;  %v46_v6 = vsel %vm40_vm0, %v45_v5, 0.0  ;;  %v59_v9 = vstv %s186_s22  ;;  %v66_v11 = vstv %s188_s23  ;;  %s328_s5 = sld [smem:[#allocation2 + $0x303]]  ;;  %s332_s6 = sld [smem:[#allocation2 + $0x81]] }
  0x17   :  { %v53_v8 = vsel %vm47_vm1, %v52_v7, %v46_v6  ;;  %v78_v13 = vstv %s190_s24  ;;  %v84_v16 = vstv %s192_s2  ;;  %s336_s7 = sld [smem:[#allocation2 + $0x380]]  ;;  %s340_s8 = sld [smem:[#allocation2 + $0x2]] }
  0x18   :  { %v60_v10 = vsel %vm54_vm2, %v59_v9, %v53_v8  ;;  %v79_v15 = vsel %vm40_vm0, %v78_v13, 0.0  ;;  %v90_v19 = vstv %s194_s1  ;;  %s344_s9 = sld [smem:[#allocation2 + $0x100]]  ;;  %s349_s10 = sld [smem:[#allocation2 + $0x381]]  ;;  %v42_v25 = vstv %s309_s25 }
  0x19   :  { %v67_v17 = vsel %vm61_vm3, %v66_v11, %v60_v10  ;;  %v85_v18 = vsel %vm47_vm1, %v84_v16, %v79_v15  ;;  %v96_v22 = vstv %s196_s26  ;;  %s351_s11 = sld [smem:[#allocation2 + $0x382]]  ;;  %s354_s12 = sld [smem:[#allocation2 + $0x3]]  ;;  %v75_v30 = vstv %s313_s27 }
  0x1a   :  { %v218_v12 = vpop.eup %217  ;;  %v91_v21 = vsel %vm54_vm2, %v90_v19, %v85_v18  ;;  %v108_v24 = vstv %s315_s28  ;;  %s357_s13 = sld [smem:[#allocation2 + $0x82]]  ;;  %s363_s14 = sld [smem:[#allocation2 + $0x101]]  ;;  %v114_v31 = vstv %s320_s29  ;;  %v43_v36 = vsel %vm40_vm0, %v42_v25, 0.0 }
  0x1b   :  { %v31_v14 = vmul.f32 0.6931472, %v218_v12  ;;  %v97_v23 = vsel %vm61_vm3, %v96_v22, %v91_v21  ;;  %v109_v28 = vsel %vm40_vm0, %v108_v24, 0.0  ;;  %v120_v32 = vstv %s324_s4  ;;  %s367_s15 = sld [smem:[#allocation2 + $0x383]]  ;;  %s376_s17 = sld [smem:[#allocation2 + $0x180]] }
  0x1c   :  { %s371_s16 = sld [smem:[#allocation2 + $0x83]]  ;;  %v115_v37 = vsel %vm47_vm1, %v114_v31, %v109_v28  ;;  %v126_v38 = vstv %s328_s5  ;;  %v49_v39 = vstv %s322_s30  ;;  %v76_v40 = vsel %vm40_vm0, %v75_v30, 0.0  ;;  %s381_s18 = sld [smem:[#allocation2 + $0x102]] }
  0x1d   :  { %v338_v20 = vsub.f32 0.0, %v31_v14  ;;  %v121_v41 = vsel %vm54_vm2, %v120_v32, %v115_v37  ;;  %v81_v42 = vstv %s332_s6  ;;  %v138_v44 = vstv %s336_s7  ;;  %s393_s19 = sld [smem:[#allocation2 + $0x181]]  ;;  %s398_s20 = sld [smem:[#allocation2 + $0x103]] }
  0x1e   :  { %v127_v43 = vsel %vm61_vm3, %v126_v38, %v121_v41  ;;  %v105_v45 = vstv %s344_s9  ;;  %v139_v47 = vsel %vm40_vm0, %v138_v44, 0.0  ;;  %v50_v48 = vsel %vm47_vm1, %v49_v39, %v43_v36  ;;  %s410_s0 = sld [smem:[#allocation2 + $0x182]]  ;;  %s211_s21 = sld [smem:[#allocation2 + $0x183]] }
  0x1f   :  { %v68_v26 = vmul.f32 %v67_v17, %v338_v20  ;;  %v98_v27 = vmul.f32 %v97_v23, %v338_v20  ;;  %v128_v46 = vmul.f32 %v127_v43, %v338_v20  ;;  %v56_v49 = vstv %s340_s8  ;;  %s270_s22 = smov [#allocation5]  }
  0x20   :  { %v220_v29 = vpop.eup %219  ;;  %v144_v50 = vstv %s349_s10  ;;  %v150_v51 = vstv %s351_s11  ;;  %v82_v52 = vsel %vm47_vm1, %v81_v42, %v76_v40  ;;  %v87_v53 = vstv %s357_s13  ;;  %s169_s23 = sshll.u32 %s270_s22, 4  ;;  %s170_s23 = int_to_ptr.vmem [resolvable:$true] %s169_s23 }
  0x21   :  { %v37_v33 = vadd.f32 1.0, %v220_v29  ;;  %v69_v34 = vmul.f32 1.442695, %v68_v26  ;;  %v99_v35 = vmul.f32 1.442695, %v98_v27  ;;  %v145_v55 = vsel %vm47_vm1, %v144_v50, %v139_v47  ;;  %s243_s24 = scalar_lea.vmem %s170_s23, 512  ;;  %p248_p6 = scmp.lt.s32.totalorder %s170_s23, %s170_s23 }
  0x22   :  { %v129_v54 = vmul.f32 1.442695, %v128_v46  ;;  %v106_v56 = vsel %vm40_vm0, %v105_v45, 0.0  ;;  %v111_v57 = vstv %s363_s14  ;;  %v151_v58 = vsel %vm54_vm2, %v150_v51, %v145_v55  ;;  %p244_p5 = scmp.ne.s32.totalorder %s170_s23, %s243_s24  ;;  %p249_p7 = scmp.lt.s32.totalorder %s243_s24, %s243_s24 }
  0x23   :  { %221 = vrcp.f32 %v37_v33  ;;  %v156_v59 = vstv %s367_s15  ;;  %v57_v60 = vsel %vm54_vm2, %v56_v49, %v50_v48  ;;  %v63_v61 = vstv %s354_s12 }
  0x24   :  { %223 = vpow2.f32 %v69_v34  ;;  %v157_v62 = vsel %vm61_vm3, %v156_v59, %v151_v58  ;;  %v88_v63 = vsel %vm54_vm2, %v87_v53, %v82_v52  ;;  %v93_v0 = vstv %s371_s16  ;;  %p250_p8 = por %p249_p7, %p248_p6 }
  0x25   :  { %225 = vpow2.f32 %v99_v35  ;;  %v135_v2 = vstv %s376_s17  ;;  %v158_v3 = vmul.f32 %v157_v62, %v338_v20  ;;  %v112_v4 = vsel %vm47_vm1, %v111_v57, %v106_v56 }
  0x26   :  { %227 = vpow2.f32 %v129_v54  ;;  %v117_v5 = vstv %s381_s18  ;;  %v64_v6 = vsel %vm61_vm3, %v63_v61, %v57_v60  ;;  %v94_v9 = vsel %vm61_vm3, %v93_v0, %v88_v63  ;;  %p251_p9 = pnand %p250_p8, %p244_p5 }
  0x27   :  { %v159_v7 = vmul.f32 1.442695, %v158_v3  ;;  %v136_v10 = vsel %vm40_vm0, %v135_v2, 0.0  ;;  %v141_v11 = vstv %s393_s19  ;;  %v118_v13 = vsel %vm54_vm2, %v117_v5, %v112_v4 }
  0x28   :  { %v123_v14 = vstv %s398_s20  ;;  %v142_v18 = vsel %vm47_vm1, %v141_v11, %v136_v10  ;;  %v147_v19 = vstv %s410_s0  ;;  %v153_v25 = vstv %s211_s21 }
  0x29   :  { %229 = vpow2.f32 %v159_v7  ;;  %v124_v21 = vsel %vm61_vm3, %v123_v14, %v118_v13  ;;  %v148_v24 = vsel %vm54_vm2, %v147_v19, %v142_v18 }
  0x2a   :  { %v154_v28 = vsel %vm61_vm3, %v153_v25, %v148_v24 }
  0x2d   :  { %v222_v8 = vpop.eup %221 }
  0x2e   :  { %v224_v12 = vpop.eup %223 }
  0x2f   :  { %v226_v15 = vpop.eup %225  ;;  %v71_v16 = vmul.f32 %v224_v12, %v64_v6 }
  0x30   :  { %v101_v17 = vmul.f32 %v226_v15, %v94_v9  ;;  %v228_v23 = vpop.eup %227 }
  0x31   :  { %v72_v20 = vmul.f32 %v222_v8, %v71_v16  ;;  %v131_v26 = vmul.f32 %v228_v23, %v124_v21 }
  0x32   :  { %v102_v22 = vmul.f32 %v222_v8, %v101_v17 }
  0x33   :  { %73 = vst [vmem:[#allocation5] sm:$0xff] %v72_v20  ;;  %v132_v27 = vmul.f32 %v222_v8, %v131_v26  ;;  %v230_v29 = vpop.eup %229 }
  0x34   :  { %103 = vst [vmem:[#allocation5 + $0x8] sm:$0xff] %v102_v22  ;;  %v161_v30 = vmul.f32 %v230_v29, %v154_v28 }
  0x35   :  { %133 = vst [vmem:[#allocation5 + $0x10] sm:$0xff] %v132_v27 }
  0x36   :  { %v162_v31 = vmul.f32 %v222_v8, %v161_v30 }
  0x38   :  { %163 = vst [vmem:[#allocation5 + $0x18] sm:$0xff] %v162_v31 }
  0x39   :  { %254 = shalt.err (!%p251_p9)
}
  0x3a   :  { %s255_s25 = scalar_lea.hbm %s462_s3, 512 }
  0x3b   :  { %p256_p10 = scmp.ne.s32.totalorder %s462_s3, %s255_s25  ;;  %p259_p11 = scmp.lt.u32.totalorder %s255_s25, %s462_s3 }
  0x3d   :  { %p261_p12 = pnand %p259_p11, %p256_p10 }
  0x3f   :  { %264 = shalt.err (!%p261_p12)
}
  0x40   :  { %s271_s30 = smov 128   ;;  %s272_s4 = smov 8  }
  0x41   :  { %175 = dma.vmem_to_hbm [thread:$0]  %s170_s23, 512, %s462_s3, [#allocation3], %s271_s30, %s271_s30, %s272_s4  }
  0x42   :  { %267 = dma.done.wait [#allocation3], 512  }
  0x43   :  { %268 = vsyncadd [#allocation3], 4294966784 }
  0x44   :  { %179 = vsyncpa [#allocation3], 1 }
  0x45   :  { %180 = vsyncpa [#allocation4], 1 }

</bundles_post_ra>
